<compile_context>
chip_gen: v7x
topology: tpu7x:2x2x1
jax: 0.10.0
libtpu: 0.0.40
codegen_flags: <defaults>
</compile_context>

<pallas_src>
import math

import jax
import jax.numpy as jnp
from jax.experimental import pallas as pl
from jax.experimental.pallas import tpu as pltpu

_LOG_SQRT_2PI = 0.5 * math.log(2.0 * math.pi)

_TARGET_BLOCK_BYTES = 6 * 1024 * 1024     # ~6 MiB of (padded) input per tile
_VMEM_LIMIT_BYTES = 48 * 1024 * 1024      # fits v5e/v6e/v7x comfortably
_MIN_PARALLEL_BLOCKS = 2                  # v7x has 2 TensorCores per chip


def _round_up(v, m):
    return (v + m - 1) // m * m


def _prior_kernel(params_ref, x_ref, o_ref):
    # params_ref lives in SMEM: [loc, k, c] with
    #   k = 0.5*exp(-2*log_scale),  c = -(log_scale + 0.5*log(2*pi))
    loc = params_ref[0]
    k = params_ref[1]
    c = params_ref[2]
    d = x_ref[...].astype(jnp.float32) - loc      # cast in-register (bf16 ok)
    o_ref[...] = c - k * (d * d)


def _compiler_params():
    return pltpu.CompilerParams(
        dimension_semantics=("parallel",),
        vmem_limit_bytes=_VMEM_LIMIT_BYTES,
    )


def _run_2d(params, x2d):
    """x2d: (rows, width); width is the full (untiled-constraint-exempt) last dim."""
    rows, width = x2d.shape
    itemsize = max(jnp.dtype(x2d.dtype).itemsize, 4)         # f32 output dominates
    row_bytes = _round_up(max(width, 1), 128) * itemsize      # padded lane footprint

    if rows <= 8:
        block_rows = rows                                     # full extent (legal)
    else:
        nblocks = max(_MIN_PARALLEL_BLOCKS,
                      -(-(rows * row_bytes) // _TARGET_BLOCK_BYTES))
        block_rows = max(8, _round_up(-(-rows // nblocks), 8))
        block_rows = min(block_rows, rows // 8 * 8)           # multiple of 8
    grid = (pl.cdiv(rows, block_rows),)

    return pl.pallas_call(
        _prior_kernel,
        out_shape=jax.ShapeDtypeStruct((rows, width), jnp.float32),
        grid=grid,
        in_specs=[
            pl.BlockSpec(memory_space=pltpu.MemorySpace.SMEM),     # params
            pl.BlockSpec((block_rows, width), lambda i: (i, 0)),   # x slab
        ],
        out_specs=pl.BlockSpec((block_rows, width), lambda i: (i, 0)),
        compiler_params=_compiler_params(),
    )(params, x2d)


def _run_3d(params, x3d):
    """x3d: (B, R, C); last two dims kept full-extent (no relayout needed)."""
    b, r, c = x3d.shape
    itemsize = max(jnp.dtype(x3d.dtype).itemsize, 4)
    slab_bytes = _round_up(max(r, 1), 8) * _round_up(max(c, 1), 128) * itemsize

    nblocks = max(_MIN_PARALLEL_BLOCKS,
                  -(-(b * slab_bytes) // _TARGET_BLOCK_BYTES))
    block_b = max(1, -(-b // nblocks))
    grid = (pl.cdiv(b, block_b),)

    return pl.pallas_call(
        _prior_kernel,
        out_shape=jax.ShapeDtypeStruct((b, r, c), jnp.float32),
        grid=grid,
        in_specs=[
            pl.BlockSpec(memory_space=pltpu.MemorySpace.SMEM),
            pl.BlockSpec((block_b, r, c), lambda i: (i, 0, 0)),
        ],
        out_specs=pl.BlockSpec((block_b, r, c), lambda i: (i, 0, 0)),
        compiler_params=_compiler_params(),
    )(params, x3d)


def log_scale_normal_prior(x, loc, log_scale):
    """Apply the LogScaleNormalPrior log-density elementwise via Pallas."""
    x = jnp.asarray(x)                    # keep native dtype; no upcast pass
    orig_shape = x.shape

    # Fold the scalar parameter math once, outside the kernel.
    loc_s = jnp.asarray(loc, jnp.float32).reshape(())
    ls_s = jnp.asarray(log_scale, jnp.float32).reshape(())
    k_s = 0.5 * jnp.exp(-2.0 * ls_s)
    c_s = -(ls_s + jnp.float32(_LOG_SQRT_2PI))
    params = jnp.stack([loc_s, k_s, c_s])  # (3,) f32 -> SMEM

    if x.ndim == 0:
        out = _run_2d(params, x.reshape(1, 1))
    elif x.ndim == 1:
        out = _run_2d(params, x.reshape(1, -1))
    elif x.ndim == 2:
        out = _run_2d(params, x)
    else:
        lead = 1
        for d in x.shape[:-2]:
            lead *= int(d)
        r, c = int(x.shape[-2]), int(x.shape[-1])
        if r % 8 == 0:
            # Merging leading dims into the sublane dim keeps the (8,128)
            # tiled layout byte-identical (r is a multiple of the sublane
            # tile), so this reshape is a pure metadata change.
            out = _run_2d(params, x.reshape(lead * r, c))
        else:
            # Collapsing only the leading (untiled) dims is always zero-copy;
            # last two dims stay in their natural shape (full-extent blocks).
            out = _run_3d(params, x.reshape(lead, r, c))

    return out.reshape(orig_shape)


def log_scale_normal_prior_ref(x, loc, log_scale):
    """Pure-JAX reference matching the PyTorch module."""
    x = jnp.asarray(x, jnp.float32)
    e = 0.5 * ((x - loc) * jnp.exp(-jnp.float32(log_scale))) ** 2
    return -e - log_scale - _LOG_SQRT_2PI


if __name__ == "__main__":
    # Deterministic "parameter init", mirroring
    # LogScaleNormalPrior(loc=0.0, scale=log(10)):
    #   self.loc = loc ; self.log_scale = log(scale)
    loc_param = 0.0
    scale_param = math.log(10.0)
    log_scale_param = math.log(scale_param)

    key = jax.random.PRNGKey(0)
    x = jax.random.normal(key, (2, 4, 16, 16), dtype=jnp.float32)  # NCHW log-scale field

    out = jax.block_until_ready(
        log_scale_normal_prior(x, loc_param, log_scale_param))
    ref = log_scale_normal_prior_ref(x, loc_param, log_scale_param)
    assert out.shape == x.shape and out.dtype == jnp.float32
    assert jnp.allclose(out, ref, atol=1e-5, rtol=1e-5), "mismatch vs reference"

    # Ragged, non-(8,128)-friendly shape -> exercises the natural-shape 3-D path
    # (no pad/unpad copies anymore).
    x2 = jax.random.normal(jax.random.PRNGKey(0), (3, 5, 7), dtype=jnp.float32)
    out2 = jax.block_until_ready(
        log_scale_normal_prior(x2, loc_param, log_scale_param))
    ref2 = log_scale_normal_prior_ref(x2, loc_param, log_scale_param)
    assert jnp.allclose(out2, ref2, atol=1e-5, rtol=1e-5), "ragged mismatch"

    # bf16 input streams natively and is cast in-register inside the kernel.
    x3 = jax.random.normal(jax.random.PRNGKey(0), (2, 4, 16, 16),
                           dtype=jnp.bfloat16)
    out3 = jax.block_until_ready(
        log_scale_normal_prior(x3, loc_param, log_scale_param))
    ref3 = log_scale_normal_prior_ref(x3.astype(jnp.float32),
                                      loc_param, log_scale_param)
    assert out3.dtype == jnp.float32
    assert jnp.allclose(out3, ref3, atol=1e-4, rtol=1e-4), "bf16 mismatch"

    print("KERNEL_OK")
</pallas_src>

<mosaic_0001>
module attributes {stable_mosaic.version = 11 : i64} {
  func.func @_prior_kernel(%arg0: i32, %arg1: memref<3xf32, #tpu.memory_space<smem>>, %arg2: memref<64x16xf32, #tpu.memory_space<vmem>>, %arg3: memref<64x16xf32, #tpu.memory_space<vmem>>) attributes {dimension_semantics = [#tpu.dimension_semantics<parallel>], iteration_bounds = array<i64: 2>, scalar_prefetch = 0 : i64, scratch_operands = 0 : i64, tpu.core_type = #tpu.core_type<tc>, window_params = [{transform_indices = @transform_0, window_bounds = array<i64: 3>}, {transform_indices = @transform_1, window_bounds = array<i64: 64, 16>}, {transform_indices = @transform_2, window_bounds = array<i64: 64, 16>}]} {
    %c0 = arith.constant 0 : index
    %0 = memref.load %arg1[%c0] : memref<3xf32, #tpu.memory_space<smem>>
    %c1 = arith.constant 1 : index
    %1 = memref.load %arg1[%c1] : memref<3xf32, #tpu.memory_space<smem>>
    %c2 = arith.constant 2 : index
    %2 = memref.load %arg1[%c2] : memref<3xf32, #tpu.memory_space<smem>>
    %c0_0 = arith.constant 0 : index
    %c0_1 = arith.constant 0 : index
    %3 = vector.load %arg2[%c0_0, %c0_1] : memref<64x16xf32, #tpu.memory_space<vmem>>, vector<64x16xf32>
    %4 = vector.broadcast %0 : f32 to vector<64x16xf32>
    %5 = arith.subf %3, %4 : vector<64x16xf32>
    %6 = arith.mulf %5, %5 : vector<64x16xf32>
    %7 = vector.broadcast %1 : f32 to vector<64x16xf32>
    %8 = arith.mulf %7, %6 : vector<64x16xf32>
    %9 = vector.broadcast %2 : f32 to vector<64x16xf32>
    %10 = arith.subf %9, %8 : vector<64x16xf32>
    %c0_2 = arith.constant 0 : index
    %c0_3 = arith.constant 0 : index
    %11 = vector.load %arg3[%c0_2, %c0_3] : memref<64x16xf32, #tpu.memory_space<vmem>>, vector<64x16xf32>
    tpu.vector_store %arg3[%c0_2, %c0_3], %10 {strides = array<i32>} : memref<64x16xf32, #tpu.memory_space<vmem>>, vector<64x16xf32>,
    return
  }
  func.func @transform_0(%arg0: i32) -> i32 {
    %c0_i32 = arith.constant 0 : i32
    %c0_i32_0 = arith.constant 0 : i32
    return %c0_i32 : i32
  }
  func.func @transform_1(%arg0: i32) -> (i32, i32) {
    %c0_i32 = arith.constant 0 : i32
    %c0_i32_0 = arith.constant 0 : i32
    return %arg0, %c0_i32 : i32, i32
  }
  func.func @transform_2(%arg0: i32) -> (i32, i32) {
    %c0_i32 = arith.constant 0 : i32
    %c0_i32_0 = arith.constant 0 : i32
    return %arg0, %c0_i32 : i32, i32
  }
}

</mosaic_0001>

<bundles_post_ra>
// kernel: tpu_custom_call.1
= control target key start
LH: loop header
LB: loop body
LE: loop exit
PB: predicated region body
PF: predicated region fallthrough
CT: control target
= control target key end

     0   :  { %7 = vsyncpa [#allocation3], 0  ;;  %s361_s9 = smov 0   ;;  %s414_s0 = inlined_call_operand.vmem [shape: f32[3], index: 0, kind: input, shape index: {}]   ;;  %s415_s1 = inlined_call_operand.vmem [shape: f32[128,16], index: 1, kind: input, shape index: {}]   ;;  %s416_s2 = inlined_call_operand.vmem [shape: f32[128,16], index: 2, kind: output, shape index: {}]  }
   0x1 LB: > { %s284_s10 = sadd.s32 4294967295, %s343_s9   ;;  %p286_p0 = scmp.ge.s32.totalorder %s343_s9, 1  ;;  %s343_s9 = sphi %s361_s9, %s13_s9  }
   0x2   : > { %p91_p1 = scmp.lt.s32.totalorder %s343_s9, 3  ;;  %s104_s13 = sshll.u32 %s414_s0, 4  ;;  %s105_s13 = int_to_ptr.vmem [resolvable:$true] %s104_s13 }
   0x3   : > { %p376_p3 = scmp.eq.s32.totalorder %s284_s10, 0  ;;  %s318_s16 = scalar_lea.vmem %s105_s13, 16 }
   0x4   : > { %p372_p2 = pnand %p286_p0, %p91_p1  ;;  %p319_p6 = scmp.ne.s32.totalorder %s105_s13, %s318_s16 }
   0x5   : > { %p326_p10 = scmp.lt.s32.totalorder %s105_s13, %s105_s13  ;;  %p327_p11 = scmp.lt.s32.totalorder %s318_s16, %s318_s16 }
   0x6   : > { %p303_p4 = pneg %p372_p2 }
   0x7   : > { %p328_p12 = por %p327_p11, %p326_p10 }
   0x8   : > { %p304_p5 = pnand %p376_p3, %p303_p4 }
   0xa   : > { %p320_p7 = pneg %p304_p5 }
   0xc   : > { %p321_p8 = pnand %p320_p7, %p319_p6 }
   0xe   : > { %p322_p9 = pneg %p321_p8 }
  0x10   : > { %p329_p13 = pnand %p328_p12, %p322_p9 }
  0x12   : > { %332 = shalt.err (!%p329_p13)
}
  0x13   : > { %s345_s17 = smov [#allocation2]   ;;  %126 = sbr.rel (%p372_p2) target bundleno = 48 (0x30), region = 28 }
  0x14   : > { %306 = dma.vmem_to_smem (!%p304_p5), %s105_s13, 16, %s345_s17, [#allocation3]  }
  0x1a   : > { %338 = dma.done.wait (%p376_p3), [#allocation3], 16  }
  0x1b   : > { %340 = vsyncadd (%p376_p3), [#allocation3], 4294967280 }
  0x1c   : > { %132 = sfence }
  0x1d   : > { %s291_s18 = sshll.u32 %s284_s10, 3  ;;  %s161_s19 = sld [smem:[#allocation2]]  ;;  %vm207_vm0 = vcmask 130048  }
  0x1e   : > { %p150_p0 = scmp.lt.s32.totalorder %s291_s18, 15  ;;  %s295_s20 = sld [smem:[#allocation2 + $0x1]] }
  0x1f   : > { %s296_s21 = sld [smem:[#allocation2 + $0x2]] }
  0x20   : > { %s420_s18 = smov (!%p150_p0, %s291_s18), 15 }
  0x21   : > { %s292_s22 = sshll.u32 %s420_s18, 3 }
  0x22   : > { %s153_s25 = scalar_lea.vmem %s415_s1, %s292_s22  ;;  %s159_s28 = scalar_lea.vmem %s416_s2, %s292_s22 }
  0x23   : > { %v172_v0 = vstv %s161_s19  ;;  %v164_v1 = vld [vmem:[%s153_s25] sm:$0xff]  ;;  %v165_v2 = vld [vmem:[%s153_s25 + $0x8] sm:$0xff]  ;;  %v166_v3 = vld [vmem:[%s153_s25 + $0x10] sm:$0xff] }
  0x24   : > { %v173_v4 = vsub.f32 %v164_v1, %v172_v0  ;;  %v189_v5 = vstv %s295_s20  ;;  %v174_v6 = vsub.f32 %v165_v2, %v172_v0  ;;  %v175_v7 = vsub.f32 %v166_v3, %v172_v0  ;;  %v167_v8 = vld [vmem:[%s153_s25 + $0x18] sm:$0xff]  ;;  %v168_v9 = vld [vmem:[%s153_s25 + $0x20] sm:$0xff]  ;;  %v169_v10 = vld [vmem:[%s153_s25 + $0x28] sm:$0xff] }
  0x25   : > { %v198_v11 = vstv %s296_s21  ;;  %v176_v12 = vsub.f32 %v167_v8, %v172_v0  ;;  %v177_v13 = vsub.f32 %v168_v9, %v172_v0  ;;  %v178_v14 = vsub.f32 %v169_v10, %v172_v0  ;;  %v170_v15 = vld [vmem:[%s153_s25 + $0x30] sm:$0xff]  ;;  %v171_v16 = vld [vmem:[%s153_s25 + $0x38] sm:$0xff] }
  0x26   : > { %v181_v17 = vmul.f32 %v173_v4, %v173_v4  ;;  %v182_v18 = vmul.f32 %v174_v6, %v174_v6  ;;  %v183_v19 = vmul.f32 %v175_v7, %v175_v7  ;;  %v179_v20 = vsub.f32 %v170_v15, %v172_v0 }
  0x27   : > { %v184_v21 = vmul.f32 %v176_v12, %v176_v12  ;;  %v185_v22 = vmul.f32 %v177_v13, %v177_v13  ;;  %v186_v23 = vmul.f32 %v178_v14, %v178_v14  ;;  %v180_v24 = vsub.f32 %v171_v16, %v172_v0 }
  0x28   : > { %v190_v25 = vmul.f32 %v189_v5, %v181_v17  ;;  %v191_v26 = vmul.f32 %v189_v5, %v182_v18  ;;  %v192_v27 = vmul.f32 %v189_v5, %v183_v19  ;;  %v187_v28 = vmul.f32 %v179_v20, %v179_v20 }
  0x29   : > { %v193_v29 = vmul.f32 %v189_v5, %v184_v21  ;;  %v194_v30 = vmul.f32 %v189_v5, %v185_v22  ;;  %v195_v31 = vmul.f32 %v189_v5, %v186_v23  ;;  %v188_v32 = vmul.f32 %v180_v24, %v180_v24 }
  0x2a   : > { %v199_v33 = vsub.f32 %v198_v11, %v190_v25  ;;  %v200_v34 = vsub.f32 %v198_v11, %v191_v26  ;;  %v201_v35 = vsub.f32 %v198_v11, %v192_v27  ;;  %v196_v36 = vmul.f32 %v189_v5, %v187_v28 }
  0x2b   : > { %v202_v37 = vsub.f32 %v198_v11, %v193_v29  ;;  %v203_v38 = vsub.f32 %v198_v11, %v194_v30  ;;  %v204_v39 = vsub.f32 %v198_v11, %v195_v31  ;;  %v197_v40 = vmul.f32 %v189_v5, %v188_v32 }
  0x2c   : > { %208 = vst.msk [vmem:[%s159_s28] sm:$0xff] %vm207_vm0, %v199_v33  ;;  %209 = vst.msk [vmem:[%s159_s28 + $0x8] sm:$0xff] %vm207_vm0, %v200_v34  ;;  %v205_v41 = vsub.f32 %v198_v11, %v196_v36 }
  0x2d   : > { %210 = vst.msk [vmem:[%s159_s28 + $0x10] sm:$0xff] %vm207_vm0, %v201_v35  ;;  %211 = vst.msk [vmem:[%s159_s28 + $0x18] sm:$0xff] %vm207_vm0, %v202_v37  ;;  %v206_v42 = vsub.f32 %v198_v11, %v197_v40 }
  0x2e   : > { %212 = vst.msk [vmem:[%s159_s28 + $0x20] sm:$0xff] %vm207_vm0, %v203_v38  ;;  %213 = vst.msk [vmem:[%s159_s28 + $0x28] sm:$0xff] %vm207_vm0, %v204_v39 }
  0x2f   : > { %214 = vst.msk [vmem:[%s159_s28 + $0x30] sm:$0xff] %vm207_vm0, %v205_v41  ;;  %215 = vst.msk [vmem:[%s159_s28 + $0x38] sm:$0xff] %vm207_vm0, %v206_v42 }
  0x30 PF: > { %s13_s9 = sadd.s32 1, %s343_s9  }
  0x31   : > { %p10_p1 = scmp.ge.s32.totalorder %s13_s9, 4  }
  0x33   :  { %12 = sbr.rel (!%p10_p1) target bundleno = 1 (0x1), region = 63 }
  0x3a   :  { %238 = vsyncpa [#allocation3], 1 }
  0x3b   :  { %240 = vsyncpa [#allocation3 + $0x1], 1 }

</bundles_post_ra>
